<compile_context>
chip_gen: v6e
topology: v6e:2x2x1
jax: 0.10.0
libtpu: 0.0.40
codegen_flags: <defaults>
</compile_context>

<pallas_src>
import jax
import jax.numpy as jnp
from jax.experimental import pallas as pl
from jax.experimental.pallas import tpu as pltpu

BN_EPS = 1e-5


def _round_up(x, m):
    return (x + m - 1) // m * m


def _vmem_limit_bytes(footprint_bytes):
    """Footprint + 25% headroom + 4 MiB slack, clamped to [32 MiB, 56 MiB]."""
    return int(min(max(footprint_bytes * 5 // 4 + (4 << 20), 32 << 20), 56 << 20))


def _matmul_stats_kernel(x_ref, w_ref, y_ref, stats_ref):
    """Pass 1: y = x @ w (bf16 in, f32 acc); store bf16 y + per-tile partial stats."""
    y = jnp.dot(x_ref[...], w_ref[...], preferred_element_type=jnp.float32)
    y_ref[...] = y.astype(y_ref.dtype)                      # bf16 store (HBM traffic)
    s = jnp.sum(y, axis=0, keepdims=True)                   # (1, C_out_pad), f32
    ss = jnp.sum(y * y, axis=0, keepdims=True)               # (1, C_out_pad), f32
    stats_ref[0:1, 0:1, :] = s[None]                          # two slice stores;
    stats_ref[0:1, 1:2, :] = ss[None]                         # no concat temporary


def _bn_apply_add_kernel(y_ref, scale_ref, shift_ref, res_ref, o_ref):
    """Pass 2: out = y * scale + shift + res (pure FMA, lane-dense stores)."""
    y = y_ref[...].astype(jnp.float32)
    o_ref[...] = (y * scale_ref[...] + shift_ref[...] + res_ref[...]).astype(o_ref.dtype)


def conv_bn_add(x265, weight, gamma, beta, x281, *, tm=1024):
    """x265: (N, C_in, H, W) NCHW; weight: (C_out, C_in); gamma/beta: (C_out,);
    x281: (N, C_out, H_out, W_out). Returns (N, C_out, H_out, W_out) f32."""
    n, c_in, h, w_dim = x265.shape
    c_out = weight.shape[0]
    h_out = (h - 1) // 2 + 1
    w_out = (w_dim - 1) // 2 + 1
    m_true = n * h_out * w_out

    # ---- layout glue: stride-2 subsample, NCHW -> (M, C) rows ----
    # allow_input_fusion on pass 1 / pass 2 lets XLA fold these producer chains
    # into the pallas operands where it can, avoiding extra HBM round trips.
    x_rows = jnp.transpose(x265[:, :, ::2, ::2].astype(jnp.bfloat16),
                           (0, 2, 3, 1)).reshape(m_true, c_in)
    res_rows = jnp.transpose(x281, (0, 2, 3, 1)).reshape(m_true, c_out).astype(jnp.float32)
    w_t = jnp.transpose(weight, (1, 0)).astype(jnp.bfloat16)          # (C_in, C_out)

    # ---- padding: lanes -> multiples of 128; rows -> multiple of the tile ----
    c_in_p = _round_up(c_in, 128)
    c_out_p = _round_up(c_out, 128)
    # bf16 operands: keep the row tile a multiple of 16 (native (16,128) tile).
    tm_eff = max(16, min(_round_up(tm, 16), _round_up(m_true, 16)))
    m_pad = _round_up(m_true, tm_eff)
    n_tiles = m_pad // tm_eff

    x_rows_p = jnp.pad(x_rows, ((0, m_pad - m_true), (0, c_in_p - c_in)))
    res_p = jnp.pad(res_rows, ((0, m_pad - m_true), (0, c_out_p - c_out)))
    w_p = jnp.pad(w_t, ((0, c_in_p - c_in), (0, c_out_p - c_out)))

    grid = (n_tiles,)

    # ---- pass 1: tiled matmul + per-tile partial sum / sumsq ----
    p1_footprint = (2 * tm_eff * c_in_p * 2          # x tile, double-buffered, bf16
                    + 1 * c_in_p * c_out_p * 2       # weight, single-buffered, bf16
                    + 2 * tm_eff * c_out_p * 2       # y tile, double-buffered, bf16
                    + 2 * 2 * c_out_p * 4)           # partial-stats tile
    y_pad, stats_part = pl.pallas_call(
        _matmul_stats_kernel,
        out_shape=(jax.ShapeDtypeStruct((m_pad, c_out_p), jnp.bfloat16),
                   jax.ShapeDtypeStruct((n_tiles, 2, c_out_p), jnp.float32)),
        grid=grid,
        in_specs=[
            pl.BlockSpec((tm_eff, c_in_p), lambda i: (i, 0)),          # x tile
            pl.BlockSpec((c_in_p, c_out_p), lambda i: (0, 0),          # weight (resident,
                         pipeline_mode=pl.Buffered(1)),                #  single buffer)
        ],
        out_specs=(
            pl.BlockSpec((tm_eff, c_out_p), lambda i: (i, 0)),         # bf16 y tile
            pl.BlockSpec((1, 2, c_out_p), lambda i: (i, 0, 0)),        # partial stats
        ),
        compiler_params=pltpu.CompilerParams(
            dimension_semantics=("parallel",),                         # megacore on v7x
            allow_input_fusion=[True, True],
            vmem_limit_bytes=_vmem_limit_bytes(p1_footprint)),
    )(x_rows_p, w_p)

    # ---- tiny wrapper step: reduce partials, fold BN into scale / shift (f32) ----
    totals = jnp.sum(stats_part, axis=0)                    # (2, C_out_pad)
    mean = totals[0] / m_true
    var = jnp.maximum(totals[1] / m_true - mean * mean, 0.0)  # biased var (PyTorch norm)
    inv_std = jax.lax.rsqrt(var + BN_EPS)
    gamma_p = jnp.pad(gamma.astype(jnp.float32), (0, c_out_p - c_out))
    beta_p = jnp.pad(beta.astype(jnp.float32), (0, c_out_p - c_out))
    scale = (gamma_p * inv_std).reshape(1, c_out_p)
    shift = (beta_p - mean * gamma_p * inv_std).reshape(1, c_out_p)
    # TODO(synk): training-mode BatchNorm also updates running_mean/running_var
    # (unbiased var, momentum=0.1); mean/var are available here but the module's
    # forward only returns x282, so the buffers are not emitted.

    # ---- pass 2: tiled scale/shift + residual add ----
    p2_footprint = (2 * tm_eff * c_out_p * 2         # y tile, bf16
                    + 2 * c_out_p * 4                # scale + shift, single-buffered
                    + 2 * tm_eff * c_out_p * 4       # residual tile, f32
                    + 2 * tm_eff * c_out_p * 4)      # output tile, f32
    out_rows_p = pl.pallas_call(
        _bn_apply_add_kernel,
        out_shape=jax.ShapeDtypeStruct((m_pad, c_out_p), jnp.float32),
        grid=grid,
        in_specs=[
            pl.BlockSpec((tm_eff, c_out_p), lambda i: (i, 0)),         # y tile (bf16)
            pl.BlockSpec((1, c_out_p), lambda i: (0, 0),
                         pipeline_mode=pl.Buffered(1)),                # scale (resident)
            pl.BlockSpec((1, c_out_p), lambda i: (0, 0),
                         pipeline_mode=pl.Buffered(1)),                # shift (resident)
            pl.BlockSpec((tm_eff, c_out_p), lambda i: (i, 0)),         # residual tile
        ],
        out_specs=pl.BlockSpec((tm_eff, c_out_p), lambda i: (i, 0)),
        compiler_params=pltpu.CompilerParams(
            dimension_semantics=("parallel",),
            allow_input_fusion=[False, False, False, True],
            vmem_limit_bytes=_vmem_limit_bytes(p2_footprint)),
    )(y_pad, scale, shift, res_p)

    # ---- strip padding, back to NCHW ----
    out_rows = out_rows_p[:m_true, :c_out]
    return jnp.transpose(out_rows.reshape(n, h_out, w_out, c_out), (0, 3, 1, 2))


def _reference(x265, weight, gamma, beta, x281):
    """Pure-JAX f32 reference of the module's forward."""
    x_sub = x265[:, :, ::2, ::2]
    y = jnp.einsum("nchw,oc->nohw", x_sub, weight)
    mean = jnp.mean(y, axis=(0, 2, 3), keepdims=True)
    var = jnp.mean((y - mean) ** 2, axis=(0, 2, 3), keepdims=True)
    bn = ((y - mean) * jax.lax.rsqrt(var + BN_EPS)
          * gamma.reshape(1, -1, 1, 1) + beta.reshape(1, -1, 1, 1))
    return bn + x281


if __name__ == "__main__":
    # Small shapes consistent with the module's structure:
    # conv2d(C_in -> C_out, 1x1, stride 2) on (N, C_in, 14, 14) -> (N, C_out, 7, 7)
    N, C_IN, C_OUT, H, W = 2, 96, 160, 14, 14

    key = jax.random.PRNGKey(0)
    k1, k2, k3, k4, k5 = jax.random.split(key, 5)

    x265 = jax.random.normal(k1, (N, C_IN, H, W), dtype=jnp.float32)
    x281 = jax.random.normal(k2, (N, C_OUT, H // 2, W // 2), dtype=jnp.float32)
    weight = jax.random.normal(k3, (C_OUT, C_IN), dtype=jnp.float32) * 0.05
    gamma = 1.0 + 0.1 * jax.random.normal(k4, (C_OUT,), dtype=jnp.float32)
    beta = 0.1 * jax.random.normal(k5, (C_OUT,), dtype=jnp.float32)

    fn = jax.jit(conv_bn_add, static_argnames=("tm",))

    # Multi-tile path (exercises the grid / partial-stats reduction) and default path.
    out_tiled = fn(x265, weight, gamma, beta, x281, tm=64)
    out_default = fn(x265, weight, gamma, beta, x281)
    jax.block_until_ready((out_tiled, out_default))

    assert out_tiled.shape == (N, C_OUT, H // 2, W // 2)
    assert out_default.shape == (N, C_OUT, H // 2, W // 2)

    ref = _reference(x265, weight, gamma, beta, x281)
    err_tiled = float(jnp.max(jnp.abs(out_tiled - ref)))
    err_default = float(jnp.max(jnp.abs(out_default - ref)))
    err_cross = float(jnp.max(jnp.abs(out_tiled - out_default)))
    assert err_tiled < 0.1, f"tiled max abs err {err_tiled}"
    assert err_default < 0.1, f"default max abs err {err_default}"
    assert err_cross < 0.1, f"cross max abs err {err_cross}"

    print("KERNEL_OK")
</pallas_src>

<mosaic_0001>
module attributes {stable_mosaic.version = 11 : i64} {
  func.func @_matmul_stats_kernel(%arg0: i32, %arg1: memref<64x128xbf16, #tpu.memory_space<vmem>>, %arg2: memref<128x256xbf16, #tpu.memory_space<vmem>>, %arg3: memref<64x256xbf16, #tpu.memory_space<vmem>>, %arg4: memref<1x2x256xf32, #tpu.memory_space<vmem>>) attributes {dimension_semantics = [#tpu.dimension_semantics<parallel>], iteration_bounds = array<i64: 2>, scalar_prefetch = 0 : i64, scratch_operands = 0 : i64, tpu.core_type = #tpu.core_type<tc>, window_params = [{transform_indices = @transform_0, window_bounds = array<i64: 64, 128>}, {pipeline_mode = #tpu.pipeline_mode<synchronous>, transform_indices = @transform_1, window_bounds = array<i64: 128, 256>}, {transform_indices = @transform_2, window_bounds = array<i64: 64, 256>}, {transform_indices = @transform_3, window_bounds = array<i64: 1, 2, 256>}]} {
    %c0 = arith.constant 0 : index
    %c0_0 = arith.constant 0 : index
    %0 = vector.load %arg1[%c0, %c0_0] : memref<64x128xbf16, #tpu.memory_space<vmem>>, vector<64x128xbf16>
    %c0_1 = arith.constant 0 : index
    %c0_2 = arith.constant 0 : index
    %1 = vector.load %arg2[%c0_1, %c0_2] : memref<128x256xbf16, #tpu.memory_space<vmem>>, vector<128x256xbf16>
    %cst = arith.constant dense<0.000000e+00> : vector<64x256xf32>
    %2 = tpu.matmul %0, %1, %cst {dimension_numbers = #tpu.dot_dimension_numbers<[1], [0], [0], [1], [0, 0, 1, 1], [], []>} : vector<64x128xbf16>, vector<128x256xbf16>, vector<64x256xf32> -> vector<64x256xf32>
    %3 = arith.truncf %2 : vector<64x256xf32> to vector<64x256xbf16>
    %c0_3 = arith.constant 0 : index
    %c0_4 = arith.constant 0 : index
    %4 = vector.load %arg3[%c0_3, %c0_4] : memref<64x256xbf16, #tpu.memory_space<vmem>>, vector<64x256xbf16>
    tpu.vector_store %arg3[%c0_3, %c0_4], %3 {strides = array<i32>} : memref<64x256xbf16, #tpu.memory_space<vmem>>, vector<64x256xbf16>,
    %cst_5 = arith.constant dense<0.000000e+00> : vector<256xf32>
    %5 = vector.multi_reduction <add>, %2, %cst_5 [0] : vector<64x256xf32> to vector<256xf32>
    %6 = vector.shape_cast %5 : vector<256xf32> to vector<1x256xf32>
    %7 = arith.mulf %2, %2 : vector<64x256xf32>
    %cst_6 = arith.constant dense<0.000000e+00> : vector<256xf32>
    %8 = vector.multi_reduction <add>, %7, %cst_6 [0] : vector<64x256xf32> to vector<256xf32>
    %9 = vector.shape_cast %8 : vector<256xf32> to vector<1x256xf32>
    %10 = vector.shape_cast %6 : vector<1x256xf32> to vector<1x1x256xf32>
    %c0_7 = arith.constant 0 : index
    %c0_8 = arith.constant 0 : index
    %c0_9 = arith.constant 0 : index
    %11 = vector.load %arg4[%c0_7, %c0_8, %c0_9] : memref<1x2x256xf32, #tpu.memory_space<vmem>>, vector<1x1x256xf32>
    tpu.vector_store %arg4[%c0_7, %c0_8, %c0_9], %10 {strides = array<i32>} : memref<1x2x256xf32, #tpu.memory_space<vmem>>, vector<1x1x256xf32>,
    %12 = vector.shape_cast %9 : vector<1x256xf32> to vector<1x1x256xf32>
    %c0_10 = arith.constant 0 : index
    %c1 = arith.constant 1 : index
    %c0_11 = arith.constant 0 : index
    %13 = vector.load %arg4[%c0_10, %c1, %c0_11] : memref<1x2x256xf32, #tpu.memory_space<vmem>>, vector<1x1x256xf32>
    tpu.vector_store %arg4[%c0_10, %c1, %c0_11], %12 {strides = array<i32>} : memref<1x2x256xf32, #tpu.memory_space<vmem>>, vector<1x1x256xf32>,
    return
  }
  func.func @transform_0(%arg0: i32) -> (i32, i32) {
    %c0_i32 = arith.constant 0 : i32
    %c0_i32_0 = arith.constant 0 : i32
    return %arg0, %c0_i32 : i32, i32
  }
  func.func @transform_1(%arg0: i32) -> (i32, i32) {
    %c0_i32 = arith.constant 0 : i32
    %c0_i32_0 = arith.constant 0 : i32
    %c0_i32_1 = arith.constant 0 : i32
    return %c0_i32, %c0_i32_0 : i32, i32
  }
  func.func @transform_2(%arg0: i32) -> (i32, i32) {
    %c0_i32 = arith.constant 0 : i32
    %c0_i32_0 = arith.constant 0 : i32
    return %arg0, %c0_i32 : i32, i32
  }
  func.func @transform_3(%arg0: i32) -> (i32, i32, i32) {
    %c0_i32 = arith.constant 0 : i32
    %c0_i32_0 = arith.constant 0 : i32
    %c0_i32_1 = arith.constant 0 : i32
    return %arg0, %c0_i32, %c0_i32_0 : i32, i32, i32
  }
}

module attributes {stable_mosaic.version = 11 : i64} {
  func.func @_bn_apply_add_kernel(%arg0: i32, %arg1: memref<64x256xbf16, #tpu.memory_space<vmem>>, %arg2: memref<1x256xf32, #tpu.memory_space<vmem>>, %arg3: memref<1x256xf32, #tpu.memory_space<vmem>>, %arg4: memref<64x256xf32, #tpu.memory_space<vmem>>, %arg5: memref<64x256xf32, #tpu.memory_space<vmem>>) attributes {dimension_semantics = [#tpu.dimension_semantics<parallel>], iteration_bounds = array<i64: 2>, scalar_prefetch = 0 : i64, scratch_operands = 0 : i64, tpu.core_type = #tpu.core_type<tc>, window_params = [{transform_indices = @transform_0, window_bounds = array<i64: 64, 256>}, {pipeline_mode = #tpu.pipeline_mode<synchronous>, transform_indices = @transform_1, window_bounds = array<i64: 1, 256>}, {pipeline_mode = #tpu.pipeline_mode<synchronous>, transform_indices = @transform_2, window_bounds = array<i64: 1, 256>}, {transform_indices = @transform_3, window_bounds = array<i64: 64, 256>}, {transform_indices = @transform_4, window_bounds = array<i64: 64, 256>}]} {
    %c0 = arith.constant 0 : index
    %c0_0 = arith.constant 0 : index
    %0 = vector.load %arg1[%c0, %c0_0] : memref<64x256xbf16, #tpu.memory_space<vmem>>, vector<64x256xbf16>
    %1 = arith.extf %0 : vector<64x256xbf16> to vector<64x256xf32>
    %c0_1 = arith.constant 0 : index
    %c0_2 = arith.constant 0 : index
    %2 = vector.load %arg2[%c0_1, %c0_2] : memref<1x256xf32, #tpu.memory_space<vmem>>, vector<1x256xf32>
    %3 = vector.broadcast %2 : vector<1x256xf32> to vector<64x256xf32>
    %4 = arith.mulf %1, %3 : vector<64x256xf32>
    %c0_3 = arith.constant 0 : index
    %c0_4 = arith.constant 0 : index
    %5 = vector.load %arg3[%c0_3, %c0_4] : memref<1x256xf32, #tpu.memory_space<vmem>>, vector<1x256xf32>
    %6 = vector.broadcast %5 : vector<1x256xf32> to vector<64x256xf32>
    %7 = arith.addf %4, %6 : vector<64x256xf32>
    %c0_5 = arith.constant 0 : index
    %c0_6 = arith.constant 0 : index
    %8 = vector.load %arg4[%c0_5, %c0_6] : memref<64x256xf32, #tpu.memory_space<vmem>>, vector<64x256xf32>
    %9 = arith.addf %7, %8 : vector<64x256xf32>
    %c0_7 = arith.constant 0 : index
    %c0_8 = arith.constant 0 : index
    %10 = vector.load %arg5[%c0_7, %c0_8] : memref<64x256xf32, #tpu.memory_space<vmem>>, vector<64x256xf32>
    tpu.vector_store %arg5[%c0_7, %c0_8], %9 {strides = array<i32>} : memref<64x256xf32, #tpu.memory_space<vmem>>, vector<64x256xf32>,
    return
  }
  func.func @transform_0(%arg0: i32) -> (i32, i32) {
    %c0_i32 = arith.constant 0 : i32
    %c0_i32_0 = arith.constant 0 : i32
    return %arg0, %c0_i32 : i32, i32
  }
  func.func @transform_1(%arg0: i32) -> (i32, i32) {
    %c0_i32 = arith.constant 0 : i32
    %c0_i32_0 = arith.constant 0 : i32
    %c0_i32_1 = arith.constant 0 : i32
    return %c0_i32, %c0_i32_0 : i32, i32
  }
  func.func @transform_2(%arg0: i32) -> (i32, i32) {
    %c0_i32 = arith.constant 0 : i32
    %c0_i32_0 = arith.constant 0 : i32
    %c0_i32_1 = arith.constant 0 : i32
    return %c0_i32, %c0_i32_0 : i32, i32
  }
  func.func @transform_3(%arg0: i32) -> (i32, i32) {
    %c0_i32 = arith.constant 0 : i32
    %c0_i32_0 = arith.constant 0 : i32
    return %arg0, %c0_i32 : i32, i32
  }
  func.func @transform_4(%arg0: i32) -> (i32, i32) {
    %c0_i32 = arith.constant 0 : i32
    %c0_i32_0 = arith.constant 0 : i32
    return %arg0, %c0_i32 : i32, i32
  }
}

</mosaic_0001>

<bundles_post_ra>
// kernel: conv_bn_add.4
= control target key start
LH: loop header
LB: loop body
LE: loop exit
PB: predicated region body
PF: predicated region fallthrough
CT: control target
= control target key end

     0   :  { %s974_s20 = smov 0   ;;  %s1285_s0 = inlined_call_operand.vmem [shape: bf16[128,256], index: 0, kind: input, shape index: {}]   ;;  %s1286_s1 = inlined_call_operand.vmem [shape: f32[1,256], index: 1, kind: input, shape index: {}]   ;;  %s1287_s2 = inlined_call_operand.vmem [shape: f32[1,256], index: 2, kind: input, shape index: {}]   ;;  %s1288_s3 = inlined_call_operand.vmem [shape: f32[98,160], index: 3, kind: input, shape index: {}]   ;;  %s1289_s4 = inlined_call_operand.<no memory space> [shape: f32[], index: 4, kind: input, shape index: {}]   ;;  %s1290_s5 = inlined_call_operand.vmem [shape: f32[128,256], index: 5, kind: output, shape index: {}]  }
   0x1   :  { %v972_v0 = vstv %s1289_s4 }
   0x2 LB: > { %s828_s21 = sadd.s32 4294967295, %s937_s20   ;;  %p832_p0 = scmp.ge.s32.totalorder %s937_s20, 1  ;;  %s937_s20 = sphi %s974_s20, %s16_s20  }
   0x3   : > { %p188_p1 = scmp.lt.s32.totalorder %s937_s20, 3 }
   0x5   : > { %p189_p2 = pnand %p832_p0, %p188_p1 }
   0x6   : > { %s982_s22 = sshll.u32 (!%p189_p2), %s828_s21, 3  ;;  %s984_s4 = sshll.u32 (!%p189_p2), %s828_s21, 6 }
   0x7   : > { %192 = sbr.rel (%p189_p2) target bundleno = 55 (0x37), region = 36  ;;  %p228_p3 = scmp.lt.s32.totalorder (!%p189_p2), %s982_s22, 15 }
   0x8   : > { %p240_p4 = scmp.lt.s32.totalorder (!%p189_p2), %s982_s22, 12  ;;  %s882_s23 = sadd.s32 (!%p189_p2), 8, %s984_s4 }
   0x9   : > { %s886_s24 = sadd.s32 (!%p189_p2), 16, %s984_s4  ;;  %s890_s14 = sadd.s32 (!%p189_p2), 24, %s984_s4 }
   0xa   : > { %s407_s15 = sadd.s32 (!%p189_p2), 4, %s982_s22  ;;  %s894_s17 = sadd.s32 (!%p189_p2), 32, %s984_s4 }
   0xb   : > { %s408_s16 = ssub.s32 (!%p189_p2), 12, %s407_s15  ;;  %s463_s18 = sadd.s32 (!%p189_p2), 5, %s982_s22 }
   0xc   : > { %v260_v1 = vlaneseq  ;;  %v262_v2 = vstv %s984_s4  ;;  %s994_s25 = scalar_select %p228_p3, %s982_s22, 15  ;;  %v298_v5 = vstv %s882_s23  ;;  %v336_v6 = vstv %s886_s24  ;;  %v654_v11 = vld [vmem:[%s1286_s1] sm:$0x3] }
   0xd   : > { %s241_s26 = scalar_select %p240_p4, %s982_s22, 12  ;;  %v682_v12 = vld [vmem:[%s1287_s2] sm:$0x3]  ;;  %v374_v34 = vstv %s890_s14  ;;  %v414_v44 = vstv %s408_s16  ;;  %v421_v47 = vstv %s894_s17 }
   0xe   : > { %v989_v3 = vshrl.u32 %v260_v1, 7  ;;  %v284_v4 = vand.u32 127, %v260_v1  ;;  %s876_s6 = sshll.u32 %s994_s25, 3  ;;  %p409_p5 = scmp.lt.s32.totalorder %s408_s16, 0  ;;  %vm1090_vm4 = vcmp.lt.s32.totalorder %v414_v44, 0 }
   0xf   : > { %s1014_s9 = scalar_lea.vmem %s1285_s0, %s876_s6  ;;  %s877_s10 = sshll.u32 %s241_s26, 4 }
  0x10   : > { %v263_v7 = vadd.s32 %v262_v2, %v989_v3  ;;  %v998_v8 = vadd.s32 128, %v284_v4  ;;  %v299_v9 = vadd.s32 %v298_v5, %v989_v3  ;;  %v337_v10 = vadd.s32 %v336_v6, %v989_v3  ;;  %s1020_s13 = scalar_lea.vmem %s1288_s3, %s877_s10  ;;  %v1023_v15 = vld [vmem:[%s1014_s9] sm:$0xff]  ;;  %v1026_v16 = vld [vmem:[%s1014_s9 + $0x8] sm:$0xff]  ;;  %s464_s19 = ssub.s32 12, %s463_s18  ;;  %v1088_v45 = vld [vmem:[%s1014_s9 + $0x10] sm:$0xff] }
  0x11   : > { %v658_v13 = vsub.s32 0, %v989_v3  ;;  %v662_v14 = vsub.s32 1, %v989_v3  ;;  %v258_v21 = vld [vmem:[%s1020_s13] sm:$0xff]  ;;  %v844_v22 = vld [vmem:[%s1020_s13 + $0x8] sm:$0xff]  ;;  %v846_v23 = vld [vmem:[%s1020_s13 + $0x10] sm:$0xff]  ;;  %v638_v24 = vunpack.c.l.bf16 %v1023_v15  ;;  %v639_v25 = vunpack.c.h.bf16 %v1023_v15  ;;  %s898_s21 = sadd.s32 40, %s984_s4 }
  0x12   : > { %vm264_vm0 = vcmp.lt.s32.totalorder %v263_v7, 98  ;;  %vm286_vm1 = vcmp.lt.s32.totalorder %v998_v8, 160  ;;  %vm300_vm2 = vcmp.lt.s32.totalorder %v299_v9, 98  ;;  %vm338_vm3 = vcmp.lt.s32.totalorder %v337_v10, 98  ;;  %v848_v31 = vld [vmem:[%s1020_s13 + $0x18] sm:$0xff]  ;;  %v850_v32 = vld [vmem:[%s1020_s13 + $0x20] sm:$0xff] }
  0x13   : > { %v1028_v17 = vrot.slane %v654_v11, %v658_v13  ;;  %v1030_v18 = vrot.slane %v654_v11, %v662_v14  ;;  %v1032_v19 = vrot.slane %v682_v12, %v658_v13  ;;  %v1034_v20 = vrot.slane %v682_v12, %v662_v14  ;;  %v852_v33 = vld [vmem:[%s1020_s13 + $0x28] sm:$0xff]  ;;  %v854_v41 = vld [vmem:[%s1020_s13 + $0x30] sm:$0xff]  ;;  %v856_v43 = vld [vmem:[%s1020_s13 + $0x38] sm:$0xff]  ;;  %s410_s23 = scalar_select %p409_p5, 0, 255 }
  0x14   : > { %v640_v26 = vunpack.c.l.bf16 %v1026_v16  ;;  %v641_v27 = vunpack.c.h.bf16 %v1026_v16  ;;  %v1047_v28 = vsel %vm264_vm0, %v258_v21, %v972_v0  ;;  %v282_v29 = vsel %vm264_vm0, %v844_v22, %v972_v0  ;;  %p465_p6 = scmp.lt.s32.totalorder %s464_s19, 0  ;;  %s519_s24 = sadd.s32 6, %s982_s22  ;;  %v1102_v53 = vld [vmem:[%s1014_s9 + $0x18] sm:$0xff]  ;;  %v634_v4 = vld [vmem:[%s1014_s9 + $0x20] sm:$0xff]  ;;  %v635_v5 = vld [vmem:[%s1014_s9 + $0x28] sm:$0xff] }
  0x15   : > { %v1053_v30 = vsel %vm300_vm2, %v846_v23, %v972_v0  ;;  %v1062_v35 = vsel %vm286_vm1, %v282_v29, %v972_v0  ;;  %v320_v36 = vsel %vm300_vm2, %v848_v31, %v972_v0  ;;  %v1068_v37 = vsel %vm338_vm3, %v850_v32, %v972_v0  ;;  %v858_v56 = vld [vmem:[%s1020_s13 + $0x40] sm:%s410_s23]  ;;  %v860_v57 = vld [vmem:[%s1020_s13 + $0x48] sm:%s410_s23]  ;;  %s520_s26 = ssub.s32 12, %s519_s24  ;;  %s902_s27 = sadd.s32 48, %s984_s4 }
  0x16   : > { %v358_v38 = vsel %vm338_vm3, %v852_v33, %v972_v0  ;;  %v1076_v39 = vsel %vm286_vm1, %v320_v36, %v972_v0  ;;  %v375_v42 = vadd.s32 %v374_v34, %v989_v3  ;;  %v470_v48 = vstv %s464_s19  ;;  %s466_s28 = scalar_select %p465_p6, 0, 255  ;;  %v636_v33 = vld [vmem:[%s1014_s9 + $0x30] sm:$0xff]  ;;  %v637_v34 = vld [vmem:[%s1014_s9 + $0x38] sm:$0xff] }
  0x17   : > { %v1081_v40 = vsel %vm286_vm1, %v358_v38, %v972_v0  ;;  %v477_v49 = vstv %s898_s21  ;;  %v422_v50 = vadd.s32 %v421_v47, %v989_v3  ;;  %vm1095_vm6 = vcmp.lt.s32.totalorder %v470_v48, 0  ;;  %p521_p7 = scmp.lt.s32.totalorder %s520_s26, 0  ;;  %s575_s29 = sadd.s32 7, %s982_s22 }
  0x18   : > { %vm376_vm5 = vcmp.lt.s32.totalorder %v375_v42, 98  ;;  %v478_v52 = vadd.s32 %v477_v49, %v989_v3  ;;  %v642_v58 = vunpack.c.l.bf16 %v1088_v45  ;;  %v643_v59 = vunpack.c.h.bf16 %v1088_v45  ;;  %v862_v7 = vld [vmem:[%s1020_s13 + $0x50] sm:%s466_s28]  ;;  %v864_v9 = vld [vmem:[%s1020_s13 + $0x58] sm:%s466_s28]  ;;  %s576_s30 = ssub.s32 12, %s575_s29  ;;  %s906_s6 = sadd.s32 56, %s984_s4 }
  0x19   : > { %v1105_v54 = vsel %vm376_vm5, %v854_v41, %v972_v0  ;;  %v396_v55 = vsel %vm376_vm5, %v856_v43, %v972_v0  ;;  %v416_v61 = vsel %vm1090_vm4, %v972_v0, %v858_v56  ;;  %vm423_vm7 = vcmp.lt.s32.totalorder %v422_v50, 98  ;;  %s522_s22 = scalar_select %p521_p7, 0, 255 }
  0x1a   : > { %v1116_v60 = vsel %vm286_vm1, %v396_v55, %v972_v0  ;;  %v444_v62 = vsel %vm1090_vm4, %v972_v0, %v860_v57  ;;  %v1126_v63 = vsel %vm423_vm7, %v416_v61, %v972_v0  ;;  %vm479_vm8 = vcmp.lt.s32.totalorder %v478_v52, 98  ;;  %p577_p8 = scmp.lt.s32.totalorder %s576_s30, 0  ;;  %s878_s7 = sshll.u32 %s994_s25, 4 }
  0x1b   : > { %v452_v1 = vsel %vm423_vm7, %v444_v62, %v972_v0  ;;  %v526_v2 = vstv %s520_s26  ;;  %v644_v11 = vunpack.c.l.bf16 %v1102_v53  ;;  %v645_v12 = vunpack.c.h.bf16 %v1102_v53  ;;  %v866_v38 = vld [vmem:[%s1020_s13 + $0x60] sm:%s522_s22]  ;;  %s1243_s9 = scalar_lea.vmem %s1290_s5, %s878_s7 }
  0x1c   : > { %v1135_v6 = vsel %vm286_vm1, %v452_v1, %v972_v0  ;;  %vm1139_vm9 = vcmp.lt.s32.totalorder %v526_v2, 0  ;;  %v472_v13 = vsel %vm1095_vm6, %v972_v0, %v862_v7  ;;  %v500_v14 = vsel %vm1095_vm6, %v972_v0, %v864_v9  ;;  %v868_v41 = vld [vmem:[%s1020_s13 + $0x68] sm:%s522_s22]  ;;  %s578_s4 = scalar_select %p577_p8, 0, 255 }
  0x1d   : > { %v533_v21 = vstv %s902_s27  ;;  %v582_v22 = vstv %s576_s30  ;;  %v1155_v23 = vsel %vm479_vm8, %v472_v13, %v972_v0  ;;  %v508_v29 = vsel %vm479_vm8, %v500_v14, %v972_v0 }
  0x1e   : > { %v534_v31 = vadd.s32 %v533_v21, %v989_v3  ;;  %vm1160_vm10 = vcmp.lt.s32.totalorder %v582_v22, 0  ;;  %v1169_v36 = vsel %vm286_vm1, %v508_v29, %v972_v0  ;;  %v646_v42 = vunpack.c.l.bf16 %v634_v4  ;;  %v870_v55 = vld [vmem:[%s1020_s13 + $0x70] sm:%s578_s4]  ;;  %v872_v56 = vld [vmem:[%s1020_s13 + $0x78] sm:%s578_s4] }
  0x1f   : > { %v647_v43 = vunpack.c.h.bf16 %v634_v4  ;;  %v648_v44 = vunpack.c.l.bf16 %v635_v5  ;;  %v528_v46 = vsel %vm1139_vm9, %v972_v0, %v866_v38  ;;  %v556_v47 = vsel %vm1139_vm9, %v972_v0, %v868_v41 }
  0x20   : > { %vm535_vm11 = vcmp.lt.s32.totalorder %v534_v31, 98  ;;  %v589_v48 = vstv %s906_s6  ;;  %v649_v52 = vunpack.c.h.bf16 %v635_v5  ;;  %v650_v57 = vunpack.c.l.bf16 %v636_v33 }
  0x21   : > { %v1180_v49 = vsel %vm535_vm11, %v528_v46, %v972_v0  ;;  %v564_v50 = vsel %vm535_vm11, %v556_v47, %v972_v0  ;;  %v590_v51 = vadd.s32 %v589_v48, %v989_v3  ;;  %v651_v61 = vunpack.c.h.bf16 %v636_v33 }
  0x22   : > { %v1187_v53 = vsel %vm286_vm1, %v564_v50, %v972_v0  ;;  %v652_v62 = vunpack.c.l.bf16 %v637_v34  ;;  %v584_v1 = vsel %vm1160_vm10, %v972_v0, %v870_v55  ;;  %v612_v3 = vsel %vm1160_vm10, %v972_v0, %v872_v56 }
  0x23   : > { %vm591_vm12 = vcmp.lt.s32.totalorder %v590_v51, 98  ;;  %v653_v2 = vunpack.c.h.bf16 %v637_v34  ;;  %v666_v7 = vmul.f32 %v1028_v17, %v638_v24  ;;  %v667_v9 = vmul.f32 %v1030_v18, %v639_v25 }
  0x24   : > { %v592_v4 = vsel %vm591_vm12, %v584_v1, %v972_v0  ;;  %v620_v5 = vsel %vm591_vm12, %v612_v3, %v972_v0  ;;  %v668_v13 = vmul.f32 %v1028_v17, %v640_v26  ;;  %v669_v14 = vmul.f32 %v1030_v18, %v641_v27 }
  0x25   : > { %v625_v10 = vsel %vm286_vm1, %v620_v5, %v972_v0  ;;  %v670_v24 = vmul.f32 %v1028_v17, %v642_v58  ;;  %v671_v15 = vmul.f32 %v1030_v18, %v643_v59  ;;  %v672_v25 = vmul.f32 %v1028_v17, %v644_v11 }
  0x26   : > { %v673_v8 = vmul.f32 %v1030_v18, %v645_v12  ;;  %v674_v21 = vmul.f32 %v1028_v17, %v646_v42  ;;  %v675_v26 = vmul.f32 %v1030_v18, %v647_v43  ;;  %v676_v16 = vmul.f32 %v1028_v17, %v648_v44 }
  0x27   : > { %v677_v27 = vmul.f32 %v1030_v18, %v649_v52  ;;  %v678_v22 = vmul.f32 %v1028_v17, %v650_v57  ;;  %v679_v58 = vmul.f32 %v1030_v18, %v651_v61  ;;  %v680_v45 = vmul.f32 %v1028_v17, %v652_v62 }
  0x28   : > { %v681_v59 = vmul.f32 %v1030_v18, %v653_v2  ;;  %v694_v11 = vadd.f32 %v1032_v19, %v666_v7  ;;  %v695_v12 = vadd.f32 %v1034_v20, %v667_v9  ;;  %v696_v29 = vadd.f32 %v1032_v19, %v668_v13 }
  0x29   : > { %v697_v31 = vadd.f32 %v1034_v20, %v669_v14  ;;  %v698_v32 = vadd.f32 %v1032_v19, %v670_v24  ;;  %v699_v33 = vadd.f32 %v1034_v20, %v671_v15  ;;  %v700_v34 = vadd.f32 %v1032_v19, %v672_v25 }
  0x2a   : > { %v701_v38 = vadd.f32 %v1034_v20, %v673_v8  ;;  %v702_v17 = vadd.f32 %v1032_v19, %v674_v21  ;;  %v703_v18 = vadd.f32 %v1034_v20, %v675_v26  ;;  %v704_v41 = vadd.f32 %v1032_v19, %v676_v16 }
  0x2b   : > { %v705_v42 = vadd.f32 %v1034_v20, %v677_v27  ;;  %v706_v43 = vadd.f32 %v1032_v19, %v678_v22  ;;  %v707_v44 = vadd.f32 %v1034_v20, %v679_v58  ;;  %v708_v46 = vadd.f32 %v1032_v19, %v680_v45 }
  0x2c   : > { %v709_v47 = vadd.f32 %v1034_v20, %v681_v59  ;;  %v726_v48 = vadd.f32 %v694_v11, %v1047_v28  ;;  %v727_v50 = vadd.f32 %v695_v12, %v1062_v35  ;;  %v728_v51 = vadd.f32 %v696_v29, %v1053_v30 }
  0x2d   : > { %v729_v52 = vadd.f32 %v697_v31, %v1076_v39  ;;  %v730_v55 = vadd.f32 %v698_v32, %v1068_v37  ;;  %v731_v56 = vadd.f32 %v699_v33, %v1081_v40  ;;  %v732_v19 = vadd.f32 %v700_v34, %v1105_v54 }
  0x2e   : > { %v733_v20 = vadd.f32 %v701_v38, %v1116_v60  ;;  %v734_v28 = vadd.f32 %v702_v17, %v1126_v63  ;;  %742 = vst [vmem:[%s1243_s9] sm:$0xff] %v726_v48  ;;  %v735_v30 = vadd.f32 %v703_v18, %v1135_v6  ;;  %v736_v35 = vadd.f32 %v704_v41, %v1155_v23 }
  0x2f   : > { %v737_v37 = vadd.f32 %v705_v42, %v1169_v36  ;;  %v738_v39 = vadd.f32 %v706_v43, %v1180_v49  ;;  %743 = vst [vmem:[%s1243_s9 + $0x8] sm:$0xff] %v727_v50  ;;  %744 = vst [vmem:[%s1243_s9 + $0x10] sm:$0xff] %v728_v51  ;;  %v739_v40 = vadd.f32 %v707_v44, %v1187_v53 }
  0x30   : > { %745 = vst [vmem:[%s1243_s9 + $0x18] sm:$0xff] %v729_v52  ;;  %746 = vst [vmem:[%s1243_s9 + $0x20] sm:$0xff] %v730_v55  ;;  %v740_v54 = vadd.f32 %v708_v46, %v592_v4  ;;  %v741_v60 = vadd.f32 %v709_v47, %v625_v10 }
  0x31   : > { %747 = vst [vmem:[%s1243_s9 + $0x28] sm:$0xff] %v731_v56  ;;  %748 = vst [vmem:[%s1243_s9 + $0x30] sm:$0xff] %v732_v19 }
  0x32   : > { %749 = vst [vmem:[%s1243_s9 + $0x38] sm:$0xff] %v733_v20  ;;  %750 = vst [vmem:[%s1243_s9 + $0x40] sm:$0xff] %v734_v28 }
  0x33   : > { %751 = vst [vmem:[%s1243_s9 + $0x48] sm:$0xff] %v735_v30  ;;  %752 = vst [vmem:[%s1243_s9 + $0x50] sm:$0xff] %v736_v35 }
  0x34   : > { %753 = vst [vmem:[%s1243_s9 + $0x58] sm:$0xff] %v737_v37  ;;  %754 = vst [vmem:[%s1243_s9 + $0x60] sm:$0xff] %v738_v39 }
  0x35   : > { %755 = vst [vmem:[%s1243_s9 + $0x68] sm:$0xff] %v739_v40  ;;  %756 = vst [vmem:[%s1243_s9 + $0x70] sm:$0xff] %v740_v54 }
  0x36   : > { %757 = vst [vmem:[%s1243_s9 + $0x78] sm:$0xff] %v741_v60 }
  0x37 PF: > { %s16_s20 = sadd.s32 1, %s937_s20  }
  0x38   : > { %p13_p9 = scmp.ge.s32.totalorder %s16_s20, 4  }
  0x3a   :  { %15 = sbr.rel (!%p13_p9) target bundleno = 2 (0x2), region = 99 }

// kernel: conv_bn_add.5
= control target key start
LH: loop header
LB: loop body
LE: loop exit
PB: predicated region body
PF: predicated region fallthrough
CT: control target
= control target key end

     0   :  { %s1705_s17 = smov 0   ;;  %s1985_s0 = inlined_call_operand.vmem [shape: bf16[96,160], index: 0, kind: input, shape index: {}]   ;;  %s1986_s1 = inlined_call_operand.<no memory space> [shape: bf16[], index: 1, kind: input, shape index: {}]   ;;  %s1987_s2 = inlined_call_operand.vmem [shape: bf16[98,96], index: 2, kind: input, shape index: {}]   ;;  %s1988_s3 = inlined_call_operand.vmem [shape: bf16[128,256], index: 3, kind: output, shape index: {0}]   ;;  %s1989_s4 = inlined_call_operand.vmem [shape: f32[2,2,256], index: 4, kind: output, shape index: {1}]  }
   0x1   :  { %v10_v0 = vstv %s1986_s1 }
   0x2   :  { %v1703_v1 = vunpack.i.l.bf16 %v10_v0 }
   0x3 LB: > { %s1711_s18 = sadd.s32 4294967295, %s1670_s17   ;;  %p1483_p0 = scmp.ge.s32.totalorder %s1670_s17, 1  ;;  %s1670_s17 = sphi %s1705_s17, %s25_s17  }
   0x4   : > { %p160_p1 = scmp.lt.s32.totalorder %s1670_s17, 3 }
   0x6   : > { %p161_p2 = pnand %p1483_p0, %p160_p1 }
   0x8   : > { %164 = sbr.rel (%p161_p2) target bundleno = 302 (0x12e), region = 28 }
   0xd   : > { %v1717_v2 = vpack.c.bf16 %v1703_v1, %v1703_v1  ;;  %v233_v3 = vlaneseq  ;;  %v1526_v4 = vld [vmem:[%s1985_s0 + $0x50] sm:$0xf]  ;;  %v1527_v5 = vld [vmem:[%s1985_s0 + $0x54] ss:$8 sps:$4 sm:$0xff]   ;;  %v1528_v6 = vld [vmem:[%s1985_s0 + $0x58] sm:$0xf] }
   0xe   : > { %909 = vst [vmem:[#allocation13 + $0x50] sm:$0xf] %v1526_v4  ;;  %v1522_v7 = vld [vmem:[%s1985_s0 + $0x40] sm:$0xf]  ;;  %v1523_v8 = vld [vmem:[%s1985_s0 + $0x44] ss:$8 sps:$4 sm:$0xff]   ;;  %v921_v13 = vunpack.c.l.bf16 %v1527_v5  ;;  %v967_v14 = vunpack.c.h.bf16 %v1527_v5 }
   0xf   : > { %v1672_v9 = vmov 0   ;;  %v1737_v10 = vand.u32 127, %v233_v3  ;;  %955 = vst [vmem:[#allocation13 + $0x58] sm:$0xf] %v1528_v6  ;;  %817 = vst [vmem:[#allocation13 + $0x40] sm:$0xf] %v1522_v7  ;;  %v829_v15 = vunpack.c.l.bf16 %v1523_v8  ;;  %v875_v16 = vunpack.c.h.bf16 %v1523_v8  ;;  %1148 = vmatprep.subr.bf16.mxu0 %v1717_v2  ;;  %1613 = vmatprep.subr.bf16.mxu1 %v1717_v2 }
  0x10   : > { %1180 = vmatprep.mubr.bf16.mxu0 %v1672_v9  ;;  %1200 = vmatprep.mubr.bf16.mxu1 %v1672_v9  ;;  %v1524_v11 = vld [vmem:[%s1985_s0 + $0x48] sm:$0xf]  ;;  %v1518_v12 = vld [vmem:[%s1985_s0 + $0x30] sm:$0xf]  ;;  %s1746_s6 = sshll.u32 %s1711_s18, 3  ;;  %v1673_v39 = vmov 0.0  }
  0x11   : > { %863 = vst [vmem:[#allocation13 + $0x48] sm:$0xf] %v1524_v11  ;;  %734 = vst [vmem:[#allocation13 + $0x30] sm:$0xf] %v1518_v12  ;;  %v1519_v17 = vld [vmem:[%s1985_s0 + $0x34] ss:$8 sps:$4 sm:$0xff]   ;;  %1149 = vmatpush1.bf16.msra.mxu0 %v1717_v2  ;;  %1621 = vmatpush1.bf16.msra.mxu1 %v1717_v2 }
  0x12   : > { %v1520_v18 = vld [vmem:[%s1985_s0 + $0x38] sm:$0xf]  ;;  %v1514_v19 = vld [vmem:[%s1985_s0 + $0x20] sm:$0xf]  ;;  %v1760_v20 = vadd.s32 128, %v1737_v10  ;;  %p199_p3 = scmp.lt.s32.totalorder %s1746_s6, 12  ;;  %v746_v23 = vunpack.c.l.bf16 %v1519_v17  ;;  %v783_v24 = vunpack.c.h.bf16 %v1519_v17  ;;  %1150 = vmatprep.subr.bf16.mxu0 %v1717_v2  ;;  %1614 = vmatprep.subr.bf16.mxu1 %v1717_v2 }
  0x13   : > { %771 = vst [vmem:[#allocation13 + $0x38] sm:$0xf] %v1520_v18  ;;  %660 = vst [vmem:[#allocation13 + $0x20] sm:$0xf] %v1514_v19  ;;  %v1515_v21 = vld [vmem:[%s1985_s0 + $0x24] ss:$8 sps:$4 sm:$0xff]  }
  0x14   : > { %v1516_v22 = vld [vmem:[%s1985_s0 + $0x28] sm:$0xf]  ;;  %v672_v25 = vunpack.c.l.bf16 %v1515_v21  ;;  %v1510_v26 = vld [vmem:[%s1985_s0 + $0x10] sm:$0xf]  ;;  %v1511_v27 = vld [vmem:[%s1985_s0 + $0x14] ss:$8 sps:$4 sm:$0xff]   ;;  %v709_v29 = vunpack.c.h.bf16 %v1515_v21 }
  0x15   : > { %697 = vst [vmem:[#allocation13 + $0x28] sm:$0xf] %v1516_v22  ;;  %v1512_v28 = vld [vmem:[%s1985_s0 + $0x18] sm:$0xf]  ;;  %vm529_vm0 = vcmp.lt.s32.totalorder %v1760_v20, 160  ;;  %v598_v30 = vunpack.c.l.bf16 %v1511_v27  ;;  %v635_v31 = vunpack.c.h.bf16 %v1511_v27  ;;  %s200_s28 = scalar_select %p199_p3, %s1746_s6, 12  ;;  %1151 = vmatpush1.bf16.msra.mxu0 %v1717_v2  ;;  %1622 = vmatpush1.bf16.msra.mxu1 %v1717_v2 }
  0x16   : > { %586 = vst [vmem:[#allocation13 + $0x10] sm:$0xf] %v1510_v26  ;;  %623 = vst [vmem:[#allocation13 + $0x18] sm:$0xf] %v1512_v28  ;;  %v501_v32 = vld [vmem:[%s1985_s0] sm:$0xf]  ;;  %v927_v34 = vsel %vm529_vm0, %v921_v13, %v1703_v1  ;;  %v973_v35 = vsel %vm529_vm0, %v967_v14, %v1703_v1  ;;  %v835_v36 = vsel %vm529_vm0, %v829_v15, %v1703_v1 }
  0x17   : > { %v1507_v33 = vld [vmem:[%s1985_s0 + $0x4] ss:$8 sps:$4 sm:$0xff]   ;;  %v881_v37 = vsel %vm529_vm0, %v875_v16, %v1703_v1  ;;  %512 = vst [vmem:[#allocation13] sm:$0xf] %v501_v32  ;;  %v1508_v38 = vld [vmem:[%s1985_s0 + $0x8] sm:$0xf]  ;;  %v929_v40 = vpack.c.bf16 %v1673_v39, %v927_v34  ;;  %v975_v41 = vpack.c.bf16 %v1673_v39, %v973_v35  ;;  %v837_v42 = vpack.c.bf16 %v1673_v39, %v835_v36 }
  0x18   : > { %s342_s5 = sadd.s32 4, %s1746_s6  ;;  %v883_v43 = vpack.c.bf16 %v1673_v39, %v881_v37  ;;  %549 = vst [vmem:[#allocation13 + $0x8] sm:$0xf] %v1508_v38  ;;  %s1485_s7 = sshll.u32 %s200_s28, 2  ;;  %v752_v44 = vsel %vm529_vm0, %v746_v23, %v1703_v1  ;;  %v789_v45 = vsel %vm529_vm0, %v783_v24, %v1703_v1  ;;  %v678_v46 = vsel %vm529_vm0, %v672_v25, %v1703_v1  ;;  %v1642_v12 = vld [vmem:[#allocation13 + $0x50] ss:$8 sps:$4 sm:$0xff]  }
  0x19   : > { %s1813_s8 = sshll.u32 %s1711_s18, 6  ;;  %v524_v47 = vunpack.c.l.bf16 %v1507_v33  ;;  %s1829_s11 = scalar_lea.vmem %s1987_s2, %s1485_s7  ;;  %932 = vst [vmem:[#allocation13 + $0x54] sm:$0xf] %v929_v40  ;;  %978 = vst [vmem:[#allocation13 + $0x5c] sm:$0xf] %v975_v41  ;;  %v754_v48 = vpack.c.bf16 %v1673_v39, %v752_v44  ;;  %v791_v49 = vpack.c.bf16 %v1673_v39, %v789_v45  ;;  %v680_v50 = vpack.c.bf16 %v1673_v39, %v678_v46 }
  0x1a   : > { %s1831_s12 = ssub.s32 12, %s342_s5  ;;  %840 = vst [vmem:[#allocation13 + $0x44] sm:$0xf] %v837_v42  ;;  %886 = vst [vmem:[#allocation13 + $0x4c] sm:$0xf] %v883_v43  ;;  %v715_v51 = vsel %vm529_vm0, %v709_v29, %v1703_v1  ;;  %v604_v53 = vsel %vm529_vm0, %v598_v30, %v1703_v1  ;;  %v641_v54 = vsel %vm529_vm0, %v635_v31, %v1703_v1  ;;  %v229_v56 = vld [vmem:[%s1829_s11] sm:$0xff]   ;;  %v561_v60 = vunpack.c.h.bf16 %v1507_v33 }
  0x1b   : > { %p344_p4 = scmp.lt.s32.totalorder %s1831_s12, 0  ;;  %v717_v52 = vpack.c.bf16 %v1673_v39, %v715_v51  ;;  %v530_v55 = vsel %vm529_vm0, %v524_v47, %v1703_v1  ;;  %s1565_s13 = sadd.s32 8, %s1813_s8  ;;  %757 = vst [vmem:[#allocation13 + $0x34] sm:$0xf] %v754_v48  ;;  %794 = vst [vmem:[#allocation13 + $0x3c] sm:$0xf] %v791_v49  ;;  %v606_v57 = vpack.c.bf16 %v1673_v39, %v604_v53  ;;  %v235_v62 = vstv %s1813_s8 }
  0x1c   : > { %683 = vst [vmem:[#allocation13 + $0x24] sm:$0xf] %v680_v50  ;;  %v643_v58 = vpack.c.bf16 %v1673_v39, %v641_v54  ;;  %v532_v59 = vpack.c.bf16 %v1673_v39, %v530_v55  ;;  %v1858_v61 = vshrl.u32 %v233_v3, 7  ;;  %s1571_s15 = sadd.s32 32, %s1813_s8  ;;  %v567_v63 = vsel %vm529_vm0, %v561_v60, %v1703_v1  ;;  %s382_s1 = sadd.s32 5, %s1746_s6  ;;  %v1495_v8 = vld [vmem:[%s1829_s11 + $0x8] sm:$0xff]  }
  0x1d   : > { %s345_s14 = scalar_select %p344_p4, 0, 255  ;;  %720 = vst [vmem:[#allocation13 + $0x2c] sm:$0xf] %v717_v52  ;;  %609 = vst [vmem:[#allocation13 + $0x14] sm:$0xf] %v606_v57  ;;  %v230_v0 = vunpack.c.l.bf16 %v229_v56  ;;  %v259_v2 = vunpack.c.h.bf16 %v229_v56  ;;  %v265_v4 = vstv %s1565_s13  ;;  %v569_v5 = vpack.c.bf16 %v1673_v39, %v567_v63 }
  0x1e   : > { %646 = vst [vmem:[#allocation13 + $0x1c] sm:$0xf] %v643_v58  ;;  %535 = vst [vmem:[#allocation13 + $0x4] sm:$0xf] %v532_v59  ;;  %v236_v6 = vadd.s32 %v235_v62, %v1858_v61  ;;  %v266_v7 = vadd.s32 %v265_v4, %v1858_v61  ;;  %s1567_s20 = sadd.s32 16, %s1813_s8  ;;  %vm242_vm1 = vcmp.lt.s32.totalorder %v1737_v10, 96  ;;  %v367_v15 = vstv %s1571_s15 }
  0x1f   : > { %s346_s16 = sshrl.u32 %s345_s14, 1  ;;  %s1569_s22 = sadd.s32 24, %s1813_s8  ;;  %572 = vst [vmem:[#allocation13 + $0xc] sm:$0xf] %v569_v5  ;;  %v296_v16 = vstv %s1567_s20  ;;  %v290_v20 = vunpack.c.l.bf16 %v1495_v8  ;;  %v1645_v22 = vld [vmem:[#allocation13 + $0x40] ss:$8 sps:$4 sm:$0xff]   ;;  %v321_v27 = vunpack.c.h.bf16 %v1495_v8  ;;  %v360_v29 = vstv %s1831_s12 }
  0x20   : > { %s347_s19 = sor.u32 %s346_s16, %s345_s14  ;;  %v1640_v11 = vld [vmem:[#allocation13 + $0x54] ss:$8 sps:$4 sm:$0xff]   ;;  %vm237_vm2 = vcmp.lt.s32.totalorder %v236_v6, 98  ;;  %vm267_vm3 = vcmp.lt.s32.totalorder %v266_v7, 98  ;;  %s1875_s24 = ssub.s32 12, %s382_s1  ;;  %v297_v21 = vadd.s32 %v296_v16, %v1858_v61  ;;  %v327_v25 = vstv %s1569_s22 }
  0x21   : > { %s348_s21 = sand.u32 85, %s347_s19  ;;  %v238_v13 = vsel %vm237_vm2, %v230_v0, %v1703_v1  ;;  %v268_v14 = vsel %vm267_vm3, %v259_v2, %v1703_v1  ;;  %1152 = vmatprep.subr.bf16.mxu0 %v1640_v11  ;;  %1615 = vmatprep.subr.bf16.mxu1 %v1640_v11  ;;  %v1643_v17 = vld [vmem:[#allocation13 + $0x44] ss:$8 sps:$4 sm:$0xff]   ;;  %p384_p5 = scmp.lt.s32.totalorder %s1875_s24, 0  ;;  %v328_v28 = vadd.s32 %v327_v25, %v1858_v61  ;;  %v1648_v32 = vld [vmem:[#allocation13 + $0x30] ss:$8 sps:$4 sm:$0xff]   ;;  %v400_v52 = vstv %s1875_s24 }
  0x22   : > { %s349_s23 = sshrl.u32 %s348_s21, 1  ;;  %v243_v18 = vsel %vm242_vm1, %v238_v13, %v1703_v1  ;;  %v273_v19 = vsel %vm242_vm1, %v268_v14, %v1703_v1  ;;  %1153 = vmatpush1.bf16.msra.mxu0 %v1642_v12  ;;  %1623 = vmatpush1.bf16.msra.mxu1 %v1642_v12  ;;  %v1646_v26 = vld [vmem:[#allocation13 + $0x34] ss:$8 sps:$4 sm:$0xff]   ;;  %v368_v30 = vadd.s32 %v367_v15, %v1858_v61  ;;  %vm298_vm4 = vcmp.lt.s32.totalorder %v297_v21, 98  ;;  %s1573_s5 = sadd.s32 40, %s1813_s8 }
  0x23   : > { %s350_s25 = sor.u32 %s349_s23, %s348_s21  ;;  %v244_v23 = vpack.c.bf16 %v1673_v39, %v243_v18  ;;  %v275_v24 = vpack.c.bf16 %v1673_v39, %v273_v19  ;;  %1154 = vmatprep.subr.bf16.mxu0 %v1643_v17  ;;  %1616 = vmatprep.subr.bf16.mxu1 %v1643_v17  ;;  %v299_v31 = vsel %vm298_vm4, %v290_v20, %v1703_v1  ;;  %vm329_vm5 = vcmp.lt.s32.totalorder %v328_v28, 98  ;;  %s422_s7 = sadd.s32 6, %s1746_s6  ;;  %v1651_v43 = vld [vmem:[#allocation13 + $0x20] ss:$8 sps:$4 sm:$0xff]   ;;  %v1654_v50 = vld [vmem:[#allocation13 + $0x10] ss:$8 sps:$4 sm:$0xff]  }
  0x24   : > { %s351_s26 = sand.u32 51, %s350_s25  ;;  %v304_v33 = vsel %vm242_vm1, %v299_v31, %v1703_v1  ;;  %v1649_v34 = vld [vmem:[#allocation13 + $0x24] ss:$8 sps:$4 sm:$0xff]   ;;  %vm1895_vm6 = vcmp.lt.s32.totalorder %v360_v29, 0  ;;  %v330_v38 = vsel %vm329_vm5, %v321_v27, %v1703_v1  ;;  %vm369_vm7 = vcmp.lt.s32.totalorder %v368_v30, 98  ;;  %s462_s10 = sadd.s32 7, %s1746_s6 }
  0x25   : > { %s352_s27 = sshrl.u32 %s351_s26, 2  ;;  %247 = vst [vmem:[#allocation12] sm:$0xf] %v244_v23  ;;  %278 = vst [vmem:[#allocation12 + $0x4] sm:$0xf] %v275_v24  ;;  %v306_v37 = vpack.c.bf16 %v1673_v39, %v304_v33  ;;  %v335_v41 = vsel %vm242_vm1, %v330_v38, %v1703_v1  ;;  %s1915_s14 = ssub.s32 12, %s422_s7  ;;  %v407_v48 = vstv %s1573_s5 }
  0x26   : > { %s353_s28 = sor.u32 %s352_s27, %s351_s26  ;;  %1155 = vmatpush1.bf16.msra.mxu0 %v1645_v22  ;;  %1624 = vmatpush1.bf16.msra.mxu1 %v1645_v22  ;;  %v337_v42 = vpack.c.bf16 %v1673_v39, %v335_v41  ;;  %v1652_v44 = vld [vmem:[#allocation13 + $0x14] ss:$8 sps:$4 sm:$0xff]   ;;  %s1920_s16 = ssub.s32 12, %s462_s10  ;;  %v1655_v51 = vld [vmem:[#allocation13 + $0x4] ss:$8 sps:$4 sm:$0xff]   ;;  %v408_v53 = vadd.s32 %v407_v48, %v1858_v61  ;;  %vm401_vm8 = vcmp.lt.s32.totalorder %v400_v52, 0  ;;  %v440_v2 = vstv %s1915_s14 }
  0x27   : > { %s354_s29 = sand.u32 15, %s353_s28  ;;  %1156 = vmatprep.subr.bf16.mxu0 %v1646_v26  ;;  %1617 = vmatprep.subr.bf16.mxu1 %v1646_v26  ;;  %309 = vst [vmem:[#allocation12 + $0x8] sm:$0xf] %v306_v37  ;;  %p424_p6 = scmp.lt.s32.totalorder %s1915_s14, 0  ;;  %v1657_v54 = vld [vmem:[#allocation13] ss:$8 sps:$4 sm:$0xff]   ;;  %v480_v5 = vstv %s1920_s16 }
  0x28   : > { %v1499_v35 = vld [vmem:[%s1829_s11 + $0x10] sm:%s354_s29]  ;;  %s385_s30 = scalar_select %p384_p5, 0, 255  ;;  %340 = vst [vmem:[#allocation12 + $0xc] sm:$0xf] %v337_v42  ;;  %vm409_vm9 = vcmp.lt.s32.totalorder %v408_v53, 98 }
  0x29   : > { %v356_v40 = vunpack.c.l.bf16 %v1499_v35  ;;  %p464_p7 = scmp.lt.s32.totalorder %s1920_s16, 0  ;;  %s1575_s23 = sadd.s32 48, %s1813_s8  ;;  %vm441_vm10 = vcmp.lt.s32.totalorder %v440_v2, 0  ;;  %vm481_vm12 = vcmp.lt.s32.totalorder %v480_v5, 0  ;;  %vm1365_vm14 = vcmp.lt.s32.totalorder %v233_v3, 256 }
  0x2a   : > { %s386_s9 = sshrl.u32 %s385_s30, 1  ;;  %1157 = vmatpush1.bf16.msra.mxu0 %v1648_v32  ;;  %1625 = vmatpush1.bf16.msra.mxu1 %v1648_v32  ;;  %s1577_s27 = sadd.s32 56, %s1813_s8  ;;  %v447_v62 = vstv %s1575_s23 }
  0x2b   : > { %v362_v45 = vsel %vm1895_vm6, %v1703_v1, %v356_v40  ;;  %s387_s12 = sor.u32 %s386_s9, %s385_s30  ;;  %1158 = vmatprep.subr.bf16.mxu0 %v1649_v34  ;;  %1618 = vmatprep.subr.bf16.mxu1 %v1649_v34  ;;  %v487_v0 = vstv %s1577_s27  ;;  %v448_v4 = vadd.s32 %v447_v62, %v1858_v61  ;;  %p209_p8 = scmp.lt.s32.totalorder %s1746_s6, 15 }
  0x2c   : > { %v370_v46 = vsel %vm369_vm7, %v362_v45, %v1703_v1  ;;  %s388_s13 = sand.u32 85, %s387_s12  ;;  %v1658_v57 = vld [vmem:[#allocation12] sm:$0xff]   ;;  %v488_v6 = vadd.s32 %v487_v0, %v1858_v61  ;;  %p215_p9 = scmp.lt.s32.totalorder %s1711_s18, 1 }
  0x2d   : > { %v375_v47 = vsel %vm242_vm1, %v370_v46, %v1703_v1  ;;  %s389_s15 = sshrl.u32 %s388_s13, 1  ;;  %vm449_vm11 = vcmp.lt.s32.totalorder %v448_v4, 98  ;;  %s1993_s6 = smov (!%p209_p8, %s1746_s6), 15 }
  0x2e   : > { %v377_v49 = vpack.c.bf16 %v1673_v39, %v375_v47  ;;  %s390_s1 = sor.u32 %s389_s15, %s388_s13  ;;  %1159 = vmatpush1.bf16.msra.mxu0 %v1651_v43  ;;  %1626 = vmatpush1.bf16.msra.mxu1 %v1651_v43  ;;  %vm489_vm13 = vcmp.lt.s32.totalorder %v488_v6, 98  ;;  %s1995_s18 = smov (!%p215_p9, %s1711_s18), 1 }
  0x2f   : > { %s391_s19 = sand.u32 51, %s390_s1  ;;  %1160 = vmatprep.subr.bf16.mxu0 %v1652_v44  ;;  %1619 = vmatprep.subr.bf16.mxu1 %v1652_v44  ;;  %v1660_v7 = vld [vmem:[#allocation12 + $0x8] sm:$0xff]  }
  0x30   : > { %380 = vst [vmem:[#allocation12 + $0x10] sm:$0xf] %v377_v49  ;;  %s392_s20 = sshrl.u32 %s391_s19, 2 }
  0x31   : > { %s393_s21 = sor.u32 %s392_s20, %s391_s19 }
  0x32   : > { %s394_s22 = sand.u32 15, %s393_s21  ;;  %1161 = vmatpush1.bf16.msra.mxu0 %v1654_v50  ;;  %1627 = vmatpush1.bf16.msra.mxu1 %v1654_v50 }
  0x33   : > { %v1501_v55 = vld [vmem:[%s1829_s11 + $0x14] sm:%s394_s22]  ;;  %s425_s25 = scalar_select %p424_p6, 0, 255  ;;  %1162 = vmatprep.subr.bf16.mxu0 %v1655_v51  ;;  %1620 = vmatprep.subr.bf16.mxu1 %v1655_v51 }
  0x34   : > { %v396_v56 = vunpack.c.l.bf16 %v1501_v55  ;;  %s465_s24 = scalar_select %p464_p7, 0, 255 }
  0x35   : > { %s426_s26 = sshrl.u32 %s425_s25, 1 }
  0x36   : > { %v402_v58 = vsel %vm401_vm8, %v1703_v1, %v396_v56  ;;  %s427_s28 = sor.u32 %s426_s26, %s425_s25  ;;  %s466_s29 = sshrl.u32 %s465_s24, 1  ;;  %1163 = vmatpush1.bf16.msra.mxu0 %v1657_v54  ;;  %1628 = vmatpush1.bf16.msra.mxu1 %v1657_v54 }
  0x37   : > { %v410_v59 = vsel %vm409_vm9, %v402_v58, %v1703_v1  ;;  %s428_s30 = sand.u32 85, %s427_s28  ;;  %s467_s5 = sor.u32 %s466_s29, %s465_s24 }
  0x38   : > { %v415_v60 = vsel %vm242_vm1, %v410_v59, %v1703_v1  ;;  %s429_s7 = sshrl.u32 %s428_s30, 1  ;;  %s468_s9 = sand.u32 85, %s467_s5 }
  0x39   : > { %v417_v63 = vpack.c.bf16 %v1673_v39, %v415_v60  ;;  %s430_s8 = sor.u32 %s429_s7, %s428_s30  ;;  %s469_s10 = sshrl.u32 %s468_s9, 1  ;;  %1181 = vmatmul.mubr.bf16.vlgmr.msra.gmra.mxu0 %v1658_v57 }
  0x3a   : > { %s431_s12 = sand.u32 51, %s430_s8  ;;  %s470_s13 = sor.u32 %s469_s10, %s468_s9  ;;  %1190 = vmatprep.mubr.bf16.mxu0 %v1672_v9 }
  0x3b   : > { %420 = vst [vmem:[#allocation12 + $0x14] sm:$0xf] %v417_v63  ;;  %s432_s15 = sshrl.u32 %s431_s12, 2  ;;  %s471_s1 = sand.u32 51, %s470_s13 }
  0x3c   : > { %s433_s19 = sor.u32 %s432_s15, %s431_s12  ;;  %s472_s20 = sshrl.u32 %s471_s1, 2 }
  0x3d   : > { %s434_s21 = sand.u32 15, %s433_s19  ;;  %s473_s22 = sor.u32 %s472_s20, %s471_s1 }
  0x3e   : > { %v1503_v8 = vld [vmem:[%s1829_s11 + $0x18] sm:%s434_s21]  ;;  %s474_s23 = sand.u32 15, %s473_s22 }
  0x3f   : > { %v436_v11 = vunpack.c.l.bf16 %v1503_v8  ;;  %v1505_v12 = vld [vmem:[%s1829_s11 + $0x1c] sm:%s474_s23]  ;;  %s1561_s11 = sshll.u32 %s1993_s6, 3  ;;  %s1562_s6 = sshll.u32 %s1995_s18, 2 }
  0x40   : > { %v476_v13 = vunpack.c.l.bf16 %v1505_v12  ;;  %s1965_s25 = scalar_lea.vmem %s1988_s3, %s1561_s11  ;;  %s219_s27 = scalar_lea.vmem %s1989_s4, %s1562_s6 }
  0x41   : > { %v442_v14 = vsel %vm441_vm10, %v1703_v1, %v436_v11  ;;  %1191 = vmatmul.mubr.bf16.gmra.mxu0 %v1660_v7 }
  0x42   : > { %v1659_v15 = vld [vmem:[#allocation12 + $0x10] sm:$0xff]   ;;  %v450_v16 = vsel %vm449_vm11, %v442_v14, %v1703_v1  ;;  %v482_v17 = vsel %vm481_vm12, %v1703_v1, %v476_v13 }
  0x43   : > { %v455_v18 = vsel %vm242_vm1, %v450_v16, %v1703_v1  ;;  %v490_v19 = vsel %vm489_vm13, %v482_v17, %v1703_v1  ;;  %1201 = vmatmul.mubr.bf16.vlgmr.msra.gmra.mxu1 %v1659_v15 }
  0x44   : > { %v457_v20 = vpack.c.bf16 %v1673_v39, %v455_v18  ;;  %v495_v21 = vsel %vm242_vm1, %v490_v19, %v1703_v1  ;;  %1210 = vmatprep.mubr.bf16.mxu1 %v1672_v9 }
  0x45   : > { %v497_v22 = vpack.c.bf16 %v1673_v39, %v495_v21 }
  0x46   : > { %460 = vst [vmem:[#allocation12 + $0x18] sm:$0xf] %v457_v20 }
  0x47   : > { %500 = vst [vmem:[#allocation12 + $0x1c] sm:$0xf] %v497_v22 }
  0x4e   : > { %v1661_v23 = vld [vmem:[#allocation12 + $0x18] sm:$0xff]  }
  0x4f   : > { %1211 = vmatmul.mubr.bf16.gmra.mxu1 %v1661_v23 }
  0xf9   : > { %v1182_v24 = vpop.f32.mrf.mxu0 }
  0xfa   : > { %v1303_v29 = vmul.f32 %v1182_v24, %v1182_v24 }
  0xfb   : > { %v1184_v10 = vpop.f32.mrf.mxu0 }
  0xfc   : > { %v1578_v25 = vpack.c.bf16 %v1184_v10, %v1182_v24  ;;  %v1304_v38 = vmul.f32 %v1184_v10, %v1184_v10 }
  0xfd   : > { %v1186_v9 = vpop.f32.mrf.mxu0 }
  0xfe   : > { %1269 = vst [vmem:[%s1965_s25] sm:$0xff] %v1578_v25  ;;  %v1305_v26 = vmul.f32 %v1186_v9, %v1186_v9  ;;  %v1277_v30 = vadd.f32 %v1186_v9, %v1182_v24 }
  0xff   : > { %v1188_v39 = vpop.f32.mrf.mxu0 }
 0x100   : > { %v1579_v27 = vpack.c.bf16 %v1188_v39, %v1186_v9  ;;  %v1306_v33 = vmul.f32 %v1188_v39, %v1188_v39  ;;  %v1319_v35 = vadd.f32 %v1305_v26, %v1303_v29  ;;  %v1290_v41 = vadd.f32 %v1188_v39, %v1184_v10 }
 0x101   : > { %v1192_v28 = vpop.f32.mrf.mxu0 }
 0x102   : > { %1270 = vst [vmem:[%s1965_s25 + $0x8] sm:$0xff] %v1579_v27  ;;  %v1307_v31 = vmul.f32 %v1192_v28, %v1192_v28  ;;  %v1278_v36 = vadd.f32 %v1277_v30, %v1192_v28  ;;  %v1332_v48 = vadd.f32 %v1306_v33, %v1304_v38 }
 0x103   : > { %v1202_v32 = vpop.f32.mrf.mxu1  ;;  %v1194_v34 = vpop.f32.mrf.mxu0 }
 0x104   : > { %v1580_v37 = vpack.c.bf16 %v1194_v34, %v1192_v28  ;;  %v1308_v42 = vmul.f32 %v1194_v34, %v1194_v34  ;;  %v1320_v45 = vadd.f32 %v1319_v35, %v1307_v31  ;;  %v1291_v50 = vadd.f32 %v1290_v41, %v1194_v34 }
 0x105   : > { %v1204_v40 = vpop.f32.mrf.mxu1  ;;  %v1196_v43 = vpop.f32.mrf.mxu0  ;;  %v1311_v52 = vmul.f32 %v1202_v32, %v1202_v32  ;;  %v1674_v35 = vmov 1966171168  }
 0x106   : > { %v1582_v44 = vpack.c.bf16 %v1204_v40, %v1202_v32  ;;  %1271 = vst [vmem:[%s1965_s25 + $0x10] sm:$0xff] %v1580_v37  ;;  %v1279_v46 = vadd.f32 %v1278_v36, %v1196_v43  ;;  %v1309_v47 = vmul.f32 %v1196_v43, %v1196_v43  ;;  %v1333_v57 = vadd.f32 %v1332_v48, %v1308_v42 }
 0x107   : > { %v1206_v49 = vpop.f32.mrf.mxu1  ;;  %v1198_v51 = vpop.f32.mrf.mxu0  ;;  %v1312_v63 = vmul.f32 %v1204_v40, %v1204_v40  ;;  %v1349_v36 = vunpack.c.l.s4 %v1674_v35 }
 0x108   : > { %1273 = vst [vmem:[%s1965_s25 + $0x20] sm:$0xff] %v1582_v44  ;;  %v1280_v53 = vadd.f32 %v1279_v46, %v1202_v32  ;;  %v1321_v54 = vadd.f32 %v1320_v45, %v1309_v47  ;;  %v1581_v55 = vpack.c.bf16 %v1198_v51, %v1196_v43  ;;  %v1292_v58 = vadd.f32 %v1291_v50, %v1198_v51 }
 0x109   : > { %v1208_v56 = vpop.f32.mrf.mxu1  ;;  %v1310_v59 = vmul.f32 %v1198_v51, %v1198_v51  ;;  %v1313_v4 = vmul.f32 %v1206_v49, %v1206_v49  ;;  %v1350_v46 = vunpack.c.0.s8 %v1349_v36 }
 0x10a   : > { %v1583_v60 = vpack.c.bf16 %v1208_v56, %v1206_v49  ;;  %v1322_v62 = vadd.f32 %v1321_v54, %v1311_v52  ;;  %1272 = vst [vmem:[%s1965_s25 + $0x18] sm:$0xff] %v1581_v55  ;;  %v1293_v0 = vadd.f32 %v1292_v58, %v1204_v40  ;;  %v1281_v5 = vadd.f32 %v1280_v53, %v1206_v49 }
 0x10b   : > { %v1334_v2 = vadd.f32 %v1333_v57, %v1310_v59  ;;  %v1314_v11 = vmul.f32 %v1208_v56, %v1208_v56  ;;  %v1353_v53 = vsub.s32 %v1350_v46, %v1858_v61 }
 0x10c   : > { %1274 = vst [vmem:[%s1965_s25 + $0x28] sm:$0xff] %v1583_v60  ;;  %v1323_v7 = vadd.f32 %v1322_v62, %v1313_v4  ;;  %v1294_v8 = vadd.f32 %v1293_v0, %v1208_v56 }
 0x10d   : > { %v1335_v6 = vadd.f32 %v1334_v2, %v1312_v63 }
 0x10f   : > { %v1212_v12 = vpop.f32.mrf.mxu1  ;;  %v1336_v16 = vadd.f32 %v1335_v6, %v1314_v11 }
 0x110   : > { %v1315_v13 = vmul.f32 %v1212_v12, %v1212_v12  ;;  %v1282_v14 = vadd.f32 %v1281_v5, %v1212_v12 }
 0x111   : > { %v1214_v15 = vpop.f32.mrf.mxu1 }
 0x112   : > { %v1584_v17 = vpack.c.bf16 %v1214_v15, %v1212_v12  ;;  %v1324_v18 = vadd.f32 %v1323_v7, %v1315_v13  ;;  %v1295_v19 = vadd.f32 %v1294_v8, %v1214_v15  ;;  %v1316_v20 = vmul.f32 %v1214_v15, %v1214_v15 }
 0x113   : > { %v1216_v21 = vpop.f32.mrf.mxu1 }
 0x114   : > { %1275 = vst [vmem:[%s1965_s25 + $0x30] sm:$0xff] %v1584_v17  ;;  %v1283_v22 = vadd.f32 %v1282_v14, %v1216_v21  ;;  %v1317_v23 = vmul.f32 %v1216_v21, %v1216_v21  ;;  %v1337_v10 = vadd.f32 %v1336_v16, %v1316_v20 }
 0x115   : > { %v1218_v24 = vpop.f32.mrf.mxu1 }
 0x116   : > { %v1284_v25 = vrot.slane %v1283_v22, 4  ;;  %v1325_v9 = vadd.f32 %v1324_v18, %v1317_v23  ;;  %v1585_v39 = vpack.c.bf16 %v1218_v24, %v1216_v21  ;;  %v1296_v26 = vadd.f32 %v1295_v19, %v1218_v24 }
 0x117   : > { %v1318_v27 = vmul.f32 %v1218_v24, %v1218_v24 }
 0x118   : > { %v1285_v28 = vadd.f32 %v1284_v25, %v1283_v22  ;;  %v1326_v29 = vrot.slane %v1325_v9, 4  ;;  %1276 = vst [vmem:[%s1965_s25 + $0x38] sm:$0xff] %v1585_v39  ;;  %v1297_v30 = vrot.slane %v1296_v26, 4 }
 0x119   : > { %v1338_v31 = vadd.f32 %v1337_v10, %v1318_v27 }
 0x11a   : > { %v1286_v32 = vrot.slane %v1285_v28, 2  ;;  %v1327_v33 = vadd.f32 %v1326_v29, %v1325_v9  ;;  %v1298_v34 = vadd.f32 %v1297_v30, %v1296_v26 }
 0x11b   : > { %v1339_v37 = vrot.slane %v1338_v31, 4 }
 0x11c   : > { %v1287_v38 = vadd.f32 %v1286_v32, %v1285_v28  ;;  %v1328_v40 = vrot.slane %v1327_v33, 2  ;;  %v1299_v41 = vrot.slane %v1298_v34, 2 }
 0x11d   : > { %v1340_v42 = vadd.f32 %v1339_v37, %v1338_v31 }
 0x11e   : > { %v1288_v43 = vrot.slane %v1287_v38, 1  ;;  %v1329_v44 = vadd.f32 %v1328_v40, %v1327_v33  ;;  %v1300_v45 = vadd.f32 %v1299_v41, %v1298_v34 }
 0x11f   : > { %v1341_v47 = vrot.slane %v1340_v42, 2 }
 0x120   : > { %v1301_v48 = vrot.slane %v1300_v45, 1  ;;  %v1330_v49 = vrot.slane %v1329_v44, 1  ;;  %v1289_v51 = vadd.f32 %v1288_v43, %v1287_v38 }
 0x121   : > { %v1342_v50 = vadd.f32 %v1341_v47, %v1340_v42 }
 0x122   : > { %v1302_v52 = vadd.f32 %v1301_v48, %v1300_v45  ;;  %v1331_v56 = vadd.f32 %v1330_v49, %v1329_v44 }
 0x123   : > { %v1343_v54 = vrot.slane %v1342_v50, 1 }
 0x124   : > { %v1347_v55 = vcombine.low %v1289_v51, %v1302_v52 }
 0x125   : > { %v1344_v57 = vadd.f32 %v1343_v54, %v1342_v50 }
 0x126   : > { %v1354_v58 = vrot.slane %v1347_v55, %v1353_v53 }
 0x127   : > { %v1370_v59 = vcombine.low %v1331_v56, %v1344_v57 }
 0x128   : > { %v1361_v60 = vrot.slane %v1354_v58, %v1353_v53 }
 0x129   : > { %v1377_v62 = vrot.slane %v1370_v59, %v1353_v53 }
 0x12a   : > { %1367 = vst.msk [vmem:[%s219_s27] ss:$2 sm:$0x3] %vm1365_vm14, %v1361_v60 }
 0x12b   : > { %v1384_v63 = vrot.slane %v1377_v62, %v1353_v53 }
 0x12d   : > { %1558 = vst.msk [vmem:[%s219_s27 + $0x1] ss:$2 sm:$0x3] %vm1365_vm14, %v1384_v63 }
 0x12e PF: > { %s25_s17 = sadd.s32 1, %s1670_s17  }
 0x12f   : > { %p22_p10 = scmp.ge.s32.totalorder %s25_s17, 4  }
 0x131   :  { %24 = sbr.rel (!%p22_p10) target bundleno = 3 (0x3), region = 139 }

</bundles_post_ra>
